<compile_context>
chip_gen: v6e
topology: v6e:2x2x1
jax: 0.10.0
libtpu: 0.0.40
codegen_flags: <defaults>
</compile_context>

<pallas_src>
import functools

import jax
import jax.numpy as jnp
from jax import lax
from jax.experimental import pallas as pl
from jax.experimental.pallas import tpu as pltpu


def _round_up(x, m):
    return (x + m - 1) // m * m


def _mm(a, b, matmul_dtype):
    """MXU matmul with f32 accumulation; optional bf16 input cast."""
    if matmul_dtype is not None:
        a = a.astype(matmul_dtype)
        b = b.astype(matmul_dtype)
    return jnp.dot(a, b, preferred_element_type=jnp.float32)


def fasttext_kernel(ids_ref, table_ref, w1_ref, b1_ref, w2_ref, b2_ref,
                    out_ref, *, inv_seq_len, num_labels, matmul_dtype):
    """Fused: gather+mean-pool -> fc1(+BN folded) -> ReLU -> fc2 -> softmax."""
    ids = ids_ref[...]                                   # (TB, S) int32
    tb, s = ids.shape
    vocab = table_ref.shape[0]

    # Fused embedding gather + mean-pool as a one-hot matmul on the MXU:
    #   counts[b, v] = (1/S) * sum_s [ids[b, s] == v]
    #   pooled       = counts @ embed_table             # (TB, E)
    # TODO(synk): for large vocabularies replace the one-hot matmul with a
    # DMA row-gather (memory_space=pl.ANY table + scalar-prefetched ids).
    vocab_iota = lax.broadcasted_iota(jnp.int32, (tb, s, vocab), 2)
    onehot = (ids[:, :, None] == vocab_iota).astype(jnp.float32)
    counts = jnp.sum(onehot, axis=1) * inv_seq_len       # (TB, V)
    pooled = _mm(counts, table_ref[...], matmul_dtype)   # (TB, E)

    # TODO(synk): nn.Dropout is identity in eval mode; training-mode masking
    # is not implemented.

    # fc[0] Linear(E->H) with fc[1] BatchNorm1d (eval) folded in by the
    # wrapper, then fc[2] ReLU. Hidden dim is lane-padded to HP.
    h = _mm(pooled, w1_ref[...], matmul_dtype) + b1_ref[...]   # (TB, HP)
    h = jnp.maximum(h, 0.0)

    # fc[3] Linear(H->L) on the lane-padded widths.
    logits = _mm(h, w2_ref[...], matmul_dtype) + b2_ref[...]   # (TB, LP)

    # fc[4] Softmax(dim=1): mask padded label lanes, stable softmax,
    # approximate reciprocal on the EUP (free slot).
    lane = lax.broadcasted_iota(jnp.int32, logits.shape, 1)
    logits = jnp.where(lane < num_labels, logits, -1e30)
    m = jnp.max(logits, axis=1, keepdims=True)
    e = jnp.exp(logits - m)
    denom = jnp.sum(e, axis=1, keepdims=True)
    out_ref[...] = (e * pl.reciprocal(denom, approx=True)).astype(out_ref.dtype)


def fasttext_forward(x, embed_table, w1, b1, gamma, beta, running_mean,
                     running_var, w2, b2, *, eps=1e-5, block_b=8,
                     matmul_dtype=None):
    """x: (B, S) int32 token ids. Returns (B, num_labels) float32 probs."""
    B, S = x.shape
    V, E = embed_table.shape
    H = w1.shape[1]
    L = w2.shape[1]

    # Fold eval-mode BatchNorm1d into fc1 (numerically identical in eval).
    scale = gamma * lax.rsqrt(running_var + eps)          # (1, H)
    w1_eff = w1 * scale                                    # (E, H)
    b1_eff = (b1 - running_mean) * scale + beta            # (1, H)

    # Lane-pad hidden / label dims to multiples of 128 (lane-dense matmuls
    # and unmasked output stores). Padded columns are zero; padded logit
    # lanes are masked inside the kernel before softmax.
    HP = _round_up(H, 128)
    LP = _round_up(L, 128)
    w1_p = jnp.pad(w1_eff, ((0, 0), (0, HP - H)))
    b1_p = jnp.pad(b1_eff, ((0, 0), (0, HP - H)))
    w2_p = jnp.pad(w2, ((0, HP - H), (0, LP - L)))
    b2_p = jnp.pad(b2, ((0, 0), (0, LP - L)))

    # Batch tile. At these sizes VMEM is trivially sufficient; on v7x
    # (64 MiB physical / ~32 MiB scoped VMEM) keep
    #   2 * (TB*S*V + TB*LP) * 4 B + padded weights
    # well under the scoped limit when scaling TB up.
    TB = min(block_b, B)
    assert B % TB == 0, "keep batch divisible by the batch tile for simplicity"
    grid = (B // TB,)

    kernel = functools.partial(
        fasttext_kernel,
        inv_seq_len=1.0 / S,
        num_labels=L,
        matmul_dtype=matmul_dtype,
    )

    out = pl.pallas_call(
        kernel,
        out_shape=jax.ShapeDtypeStruct((B, LP), jnp.float32),
        grid=grid,
        in_specs=[
            pl.BlockSpec((TB, S), lambda i: (i, 0)),    # token ids (batch-tiled)
            pl.BlockSpec((V, E), lambda i: (0, 0)),     # embedding table (resident)
            pl.BlockSpec((E, HP), lambda i: (0, 0)),    # fc1 weight (BN folded, resident)
            pl.BlockSpec((1, HP), lambda i: (0, 0)),    # fc1 bias (BN folded, resident)
            pl.BlockSpec((HP, LP), lambda i: (0, 0)),   # fc2 weight (resident)
            pl.BlockSpec((1, LP), lambda i: (0, 0)),    # fc2 bias (resident)
        ],
        out_specs=pl.BlockSpec((TB, LP), lambda i: (i, 0)),
        compiler_params=pltpu.CompilerParams(
            dimension_semantics=("parallel",)),
    )(x, embed_table, w1_p, b1_p, w2_p, b2_p)

    return out[:, :L]


def reference_forward(x, embed_table, w1, b1, gamma, beta, running_mean,
                      running_var, w2, b2, eps=1e-5):
    """Pure-JAX reference matching the PyTorch module in eval mode."""
    emb = jnp.take(embed_table, x, axis=0)               # (B, S, E)
    pooled = jnp.mean(emb, axis=1)                       # (B, E)
    h = pooled @ w1 + b1
    h = (h - running_mean) * lax.rsqrt(running_var + eps) * gamma + beta
    h = jnp.maximum(h, 0.0)
    logits = h @ w2 + b2
    return jax.nn.softmax(logits, axis=1)


if __name__ == "__main__":
    # Small, TPU-friendly shapes consistent with the module's forward.
    B, S = 16, 8           # batch, sequence length (grid = (2,) with TB=8)
    VOCAB = 64
    E = 32                 # embed_dim
    H = 32                 # hidden_size
    L = 8                  # num_labels

    key = jax.random.PRNGKey(0)
    k_x, k_emb, k_w1, k_b1, k_w2, k_b2 = jax.random.split(key, 6)

    x = jax.random.randint(k_x, (B, S), 0, VOCAB, dtype=jnp.int32)

    # Deterministic synthetic parameters (shapes follow the module __init__).
    embed_table = jax.random.normal(k_emb, (VOCAB, E), dtype=jnp.float32)
    w1 = jax.random.normal(k_w1, (E, H), dtype=jnp.float32) * 0.1
    b1 = jax.random.normal(k_b1, (1, H), dtype=jnp.float32) * 0.1
    w2 = jax.random.normal(k_w2, (H, L), dtype=jnp.float32) * 0.1
    b2 = jax.random.normal(k_b2, (1, L), dtype=jnp.float32) * 0.1
    # BatchNorm1d default init / fresh running stats.
    gamma = jnp.ones((1, H), dtype=jnp.float32)
    beta = jnp.zeros((1, H), dtype=jnp.float32)
    running_mean = jnp.zeros((1, H), dtype=jnp.float32)
    running_var = jnp.ones((1, H), dtype=jnp.float32)

    out = fasttext_forward(x, embed_table, w1, b1, gamma, beta,
                           running_mean, running_var, w2, b2, block_b=8)
    out = jax.block_until_ready(out)

    ref = reference_forward(x, embed_table, w1, b1, gamma, beta,
                            running_mean, running_var, w2, b2)

    assert out.shape == (B, L)
    # Softmax rows sum to ~1 (approx EUP reciprocal -> relax tolerance).
    assert jnp.allclose(jnp.sum(out, axis=1), 1.0, atol=1e-2)
    # Matches the eval-mode reference.
    assert jnp.allclose(out, ref, atol=1e-2), float(jnp.max(jnp.abs(out - ref)))

    print("KERNEL_OK")
</pallas_src>

<mosaic_0001>
module attributes {stable_mosaic.version = 11 : i64} {
  func.func @fasttext_kernel(%arg0: i32, %arg1: memref<8x8xi32, #tpu.memory_space<vmem>>, %arg2: memref<64x32xf32, #tpu.memory_space<vmem>>, %arg3: memref<32x128xf32, #tpu.memory_space<vmem>>, %arg4: memref<1x128xf32, #tpu.memory_space<vmem>>, %arg5: memref<128x128xf32, #tpu.memory_space<vmem>>, %arg6: memref<1x128xf32, #tpu.memory_space<vmem>>, %arg7: memref<8x128xf32, #tpu.memory_space<vmem>>) attributes {dimension_semantics = [#tpu.dimension_semantics<parallel>], iteration_bounds = array<i64: 2>, scalar_prefetch = 0 : i64, scratch_operands = 0 : i64, tpu.core_type = #tpu.core_type<tc>, window_params = [{transform_indices = @transform_0, window_bounds = array<i64: 8, 8>}, {pipeline_mode = #tpu.pipeline_mode<synchronous>, transform_indices = @transform_1, window_bounds = array<i64: 64, 32>}, {pipeline_mode = #tpu.pipeline_mode<synchronous>, transform_indices = @transform_2, window_bounds = array<i64: 32, 128>}, {pipeline_mode = #tpu.pipeline_mode<synchronous>, transform_indices = @transform_3, window_bounds = array<i64: 1, 128>}, {pipeline_mode = #tpu.pipeline_mode<synchronous>, transform_indices = @transform_4, window_bounds = array<i64: 128, 128>}, {pipeline_mode = #tpu.pipeline_mode<synchronous>, transform_indices = @transform_5, window_bounds = array<i64: 1, 128>}, {transform_indices = @transform_6, window_bounds = array<i64: 8, 128>}]} {
    %c0 = arith.constant 0 : index
    %c0_0 = arith.constant 0 : index
    %0 = vector.load %arg1[%c0, %c0_0] : memref<8x8xi32, #tpu.memory_space<vmem>>, vector<8x8xi32>
    %1 = tpu.iota {dimensions = array<i32: 2>} : vector<8x8x64xi32>
    %2 = vector.shape_cast %0 : vector<8x8xi32> to vector<8x8x1xi32>
    %3 = vector.broadcast %2 : vector<8x8x1xi32> to vector<8x8x64xi32>
    %4 = arith.cmpi eq, %3, %1 : vector<8x8x64xi32>
    %5 = arith.extui %4 : vector<8x8x64xi1> to vector<8x8x64xi32>
    %6 = arith.sitofp %5 : vector<8x8x64xi32> to vector<8x8x64xf32>
    %cst = arith.constant dense<0.000000e+00> : vector<8x64xf32>
    %7 = vector.multi_reduction <add>, %6, %cst [1] : vector<8x8x64xf32> to vector<8x64xf32>
    %cst_1 = arith.constant 1.250000e-01 : f32
    %8 = vector.broadcast %cst_1 : f32 to vector<8x64xf32>
    %9 = arith.mulf %7, %8 : vector<8x64xf32>
    %c0_2 = arith.constant 0 : index
    %c0_3 = arith.constant 0 : index
    %10 = vector.load %arg2[%c0_2, %c0_3] : memref<64x32xf32, #tpu.memory_space<vmem>>, vector<64x32xf32>
    %cst_4 = arith.constant dense<0.000000e+00> : vector<8x32xf32>
    %11 = tpu.matmul %9, %10, %cst_4 {dimension_numbers = #tpu.dot_dimension_numbers<[1], [0], [0], [1], [0, 0, 1, 1], [], []>} : vector<8x64xf32>, vector<64x32xf32>, vector<8x32xf32> -> vector<8x32xf32>
    %c0_5 = arith.constant 0 : index
    %c0_6 = arith.constant 0 : index
    %12 = vector.load %arg3[%c0_5, %c0_6] : memref<32x128xf32, #tpu.memory_space<vmem>>, vector<32x128xf32>
    %cst_7 = arith.constant dense<0.000000e+00> : vector<8x128xf32>
    %13 = tpu.matmul %11, %12, %cst_7 {dimension_numbers = #tpu.dot_dimension_numbers<[1], [0], [0], [1], [0, 0, 1, 1], [], []>} : vector<8x32xf32>, vector<32x128xf32>, vector<8x128xf32> -> vector<8x128xf32>
    %c0_8 = arith.constant 0 : index
    %c0_9 = arith.constant 0 : index
    %14 = vector.load %arg4[%c0_8, %c0_9] : memref<1x128xf32, #tpu.memory_space<vmem>>, vector<1x128xf32>
    %15 = vector.broadcast %14 : vector<1x128xf32> to vector<8x128xf32>
    %16 = arith.addf %13, %15 : vector<8x128xf32>
    %cst_10 = arith.constant 0.000000e+00 : f32
    %17 = vector.broadcast %cst_10 : f32 to vector<8x128xf32>
    %18 = arith.maximumf %16, %17 : vector<8x128xf32>
    %c0_11 = arith.constant 0 : index
    %c0_12 = arith.constant 0 : index
    %19 = vector.load %arg5[%c0_11, %c0_12] : memref<128x128xf32, #tpu.memory_space<vmem>>, vector<128x128xf32>
    %cst_13 = arith.constant dense<0.000000e+00> : vector<8x128xf32>
    %20 = tpu.matmul %18, %19, %cst_13 {dimension_numbers = #tpu.dot_dimension_numbers<[1], [0], [0], [1], [0, 0, 1, 1], [], []>} : vector<8x128xf32>, vector<128x128xf32>, vector<8x128xf32> -> vector<8x128xf32>
    %c0_14 = arith.constant 0 : index
    %c0_15 = arith.constant 0 : index
    %21 = vector.load %arg6[%c0_14, %c0_15] : memref<1x128xf32, #tpu.memory_space<vmem>>, vector<1x128xf32>
    %22 = vector.broadcast %21 : vector<1x128xf32> to vector<8x128xf32>
    %23 = arith.addf %20, %22 : vector<8x128xf32>
    %24 = tpu.iota {dimensions = array<i32: 1>} : vector<8x128xi32>
    %c8_i32 = arith.constant 8 : i32
    %25 = vector.broadcast %c8_i32 : i32 to vector<8x128xi32>
    %26 = arith.cmpi slt, %24, %25 : vector<8x128xi32>
    %cst_16 = arith.constant -1.000000e+30 : f32
    %27 = vector.broadcast %cst_16 : f32 to vector<8x128xf32>
    %28 = arith.select %26, %23, %27 : vector<8x128xi1>, vector<8x128xf32>
    %cst_17 = arith.constant dense<0xFF800000> : vector<8xf32>
    %29 = vector.multi_reduction <maximumf>, %28, %cst_17 [1] : vector<8x128xf32> to vector<8xf32>
    %30 = vector.shape_cast %29 : vector<8xf32> to vector<8x1xf32>
    %31 = vector.broadcast %30 : vector<8x1xf32> to vector<8x128xf32>
    %32 = arith.subf %28, %31 : vector<8x128xf32>
    %33 = math.exp %32 : vector<8x128xf32>
    %cst_18 = arith.constant dense<0.000000e+00> : vector<8xf32>
    %34 = vector.multi_reduction <add>, %33, %cst_18 [1] : vector<8x128xf32> to vector<8xf32>
    %35 = vector.shape_cast %34 : vector<8xf32> to vector<8x1xf32>
    %36 = tpu.reciprocal %35 {approx = true} : vector<8x1xf32> -> vector<8x1xf32>
    %37 = vector.broadcast %36 : vector<8x1xf32> to vector<8x128xf32>
    %38 = arith.mulf %33, %37 : vector<8x128xf32>
    %c0_19 = arith.constant 0 : index
    %c0_20 = arith.constant 0 : index
    %39 = vector.load %arg7[%c0_19, %c0_20] : memref<8x128xf32, #tpu.memory_space<vmem>>, vector<8x128xf32>
    tpu.vector_store %arg7[%c0_19, %c0_20], %38 {strides = array<i32>} : memref<8x128xf32, #tpu.memory_space<vmem>>, vector<8x128xf32>,
    return
  }
  func.func @transform_0(%arg0: i32) -> (i32, i32) {
    %c0_i32 = arith.constant 0 : i32
    %c0_i32_0 = arith.constant 0 : i32
    return %arg0, %c0_i32 : i32, i32
  }
  func.func @transform_1(%arg0: i32) -> (i32, i32) {
    %c0_i32 = arith.constant 0 : i32
    %c0_i32_0 = arith.constant 0 : i32
    %c0_i32_1 = arith.constant 0 : i32
    return %c0_i32, %c0_i32_0 : i32, i32
  }
  func.func @transform_2(%arg0: i32) -> (i32, i32) {
    %c0_i32 = arith.constant 0 : i32
    %c0_i32_0 = arith.constant 0 : i32
    %c0_i32_1 = arith.constant 0 : i32
    return %c0_i32, %c0_i32_0 : i32, i32
  }
  func.func @transform_3(%arg0: i32) -> (i32, i32) {
    %c0_i32 = arith.constant 0 : i32
    %c0_i32_0 = arith.constant 0 : i32
    %c0_i32_1 = arith.constant 0 : i32
    return %c0_i32, %c0_i32_0 : i32, i32
  }
  func.func @transform_4(%arg0: i32) -> (i32, i32) {
    %c0_i32 = arith.constant 0 : i32
    %c0_i32_0 = arith.constant 0 : i32
    %c0_i32_1 = arith.constant 0 : i32
    return %c0_i32, %c0_i32_0 : i32, i32
  }
  func.func @transform_5(%arg0: i32) -> (i32, i32) {
    %c0_i32 = arith.constant 0 : i32
    %c0_i32_0 = arith.constant 0 : i32
    %c0_i32_1 = arith.constant 0 : i32
    return %c0_i32, %c0_i32_0 : i32, i32
  }
  func.func @transform_6(%arg0: i32) -> (i32, i32) {
    %c0_i32 = arith.constant 0 : i32
    %c0_i32_0 = arith.constant 0 : i32
    return %arg0, %c0_i32 : i32, i32
  }
}

</mosaic_0001>

<bundles_post_ra>
// kernel: tpu_custom_call.1
= control target key start
LH: loop header
LB: loop body
LE: loop exit
PB: predicated region body
PF: predicated region fallthrough
CT: control target
= control target key end

     0   :  { %11 = vsyncpa [#allocation3], 0  ;;  %s1308_s0 = inlined_call_operand.vmem [shape: s32[16,8], index: 0, kind: input, shape index: {}]   ;;  %s1309_s1 = inlined_call_operand.vmem [shape: f32[64,32], index: 1, kind: input, shape index: {}]   ;;  %s1310_s2 = inlined_call_operand.vmem [shape: f32[32,128], index: 2, kind: input, shape index: {}]   ;;  %s1311_s3 = inlined_call_operand.vmem [shape: f32[1,128], index: 3, kind: input, shape index: {}]   ;;  %s1312_s4 = inlined_call_operand.hbm [shape: f32[128,128], index: 4, kind: input, shape index: {}]   ;;  %s1313_s5 = inlined_call_operand.vmem [shape: f32[1,128], index: 5, kind: input, shape index: {}]   ;;  %s1314_s6 = inlined_call_operand.hbm [shape: f32[16,128], index: 6, kind: output, shape index: {}]  }
   0x1   :  { %12 = vsyncpa [#allocation4], 0 }
   0x2   :  { %14 = vsyncpa [#allocation4 + $0x1], 0  ;;  %s1099_s21 = smov 0   ;;  %s1101_s22 = smov 0  }
   0x3   :  { %s1103_s23 = smov 0   ;;  %s1105_s24 = smov 0  }
   0x4 LB: > { %s1120_s25 = sadd.s32 4294967295, %s1056_s24   ;;  %s788_s26 = sadd.s32 4294967294, %s1056_s24   ;;  %s1056_s24 = sphi %s1105_s24, %s1322_s24   ;;  %s1052_s23 = sphi %s1103_s23, %s1321_s23   ;;  %s1048_s22 = sphi %s1101_s22, %s1320_s22   ;;  %s1044_s21 = sphi %s1099_s21, %s1319_s21  }
   0x5   : > { %s1124_s27 = sadd.s32 1, %s1056_s24   ;;  %s158_s28 = sadd.s32 1, %s1052_s23 }
   0x6   : > { %s155_s29 = ssub.s32 %s1056_s24, %s1124_s27  ;;  %p168_p0 = scmp.ne.s32.totalorder %s1052_s23, %s1048_s22 }
   0x7   : > { %p156_p1 = scmp.eq.s32.totalorder %s155_s29, 0  ;;  %p169_p2 = scmp.eq.s32.totalorder %s1120_s25, 1 }
   0x8   : > { %p174_p3 = scmp.ne.s32.totalorder %s1048_s22, %s1044_s21  ;;  %p175_p4 = scmp.eq.s32.totalorder %s788_s26, 1 }
   0x9   : > { %s1135_s30 = scalar_select %p156_p1, %s1052_s23, %s158_s28  }
   0xa   : > { %p1137_p5 = por %p169_p2, %p168_p0  ;;  %p1141_p6 = por %p175_p4, %p174_p3 }
   0xb   : > { %p789_p7 = scmp.ge.s32.totalorder %s1056_s24, 1  ;;  %p182_p8 = scmp.lt.s32.totalorder %s1056_s24, 3 }
   0xc   : > { %s1316_s8 = scalar_select %p1141_p6, 1, 0 }
   0xd   : > { %p922_p9 = scmp.eq.s32.totalorder %s1120_s25, 0  ;;  %p1148_p10 = pnand %p789_p7, %p182_p8 }
   0xe   : > { %s1058_s10 = smov [#allocation2]  }
   0xf   : > { %s203_s11 = sshll.u32 %s1058_s10, 4  ;;  %p914_p11 = pneg %p1148_p10  ;;  %s204_s11 = int_to_ptr.vmem [resolvable:$true] %s203_s11 }
  0x10   : > { %s977_s12 = scalar_lea.vmem %s204_s11, 2048  ;;  %p985_p3 = scmp.lt.s32.totalorder %s204_s11, %s204_s11 }
  0x11   : > { %p915_p12 = pnand %p922_p9, %p914_p11  ;;  %p978_p0 = scmp.ne.s32.totalorder %s204_s11, %s977_s12 }
  0x12   : > { %p986_p4 = scmp.lt.s32.totalorder %s977_s12, %s977_s12 }
  0x13   : > { %p968_p13 = pneg %p915_p12 }
  0x14   : > { %p987_p6 = por %p986_p4, %p985_p3 }
  0x15   : > { %p980_p1 = pnand %p978_p0, %p968_p13 }
  0x17   : > { %p981_p2 = pneg %p980_p1 }
  0x19   : > { %p988_p7 = pnand %p987_p6, %p981_p2 }
  0x1b   : > { %991 = shalt.err (!%p988_p7)
}
  0x1c   : > { %s1059_s13 = smov 128   ;;  %s1060_s14 = smov 8  }
  0x1d   : > { %917 = dma.hbm_to_vmem [thread:$0]  (!%p915_p12), %s1312_s4, 2048, %s204_s11, [#allocation3], %s1059_s13, %s1059_s13, %s1060_s14  }
  0x1e   : > { %229 = sbr.rel (%p1148_p10) target bundleno = 1102 (0x44e), region = 44 }
  0x23   : > { %1035 = dma.done.wait (%p922_p9), [#allocation3], 2048  }
  0x24   : > { %1037 = vsyncadd (%p922_p9), [#allocation3], 4294965248  ;;  %p258_p8 = scmp.lt.s32.totalorder %s1120_s25, 1  ;;  %v263_v0 = vlaneseq  ;;  %v1061_v1 = vmov 0.0   ;;  %v417_v18 = vld [vmem:[%s1309_s1 + $0x38] sm:$0xff]  ;;  %v416_v19 = vld [vmem:[%s1309_s1 + $0x30] sm:$0xff] }
  0x25   : > { %843 = vmatprep.subr.mxu0 %v1061_v1  ;;  %873 = vmatprep.subr.mxu1 %v1061_v1  ;;  %v415_v22 = vld [vmem:[%s1309_s1 + $0x28] sm:$0xff]  ;;  %v414_v23 = vld [vmem:[%s1309_s1 + $0x20] sm:$0xff]  ;;  %v413_v24 = vld [vmem:[%s1309_s1 + $0x18] sm:$0xff]  ;;  %vm1062_vm0 = vmmov 0   ;;  %vm345_vm1 = vcmask 523264   ;;  %vm426_vm10 = vcmask 1041409  }
  0x26   : > { %s259_s17 = scalar_select %p258_p8, %s1120_s25, 1  ;;  %v266_v2 = vshrl.u32 %v263_v0, 7  ;;  %844 = vmatpush3.msra.mxu0 %v417_v18  ;;  %v412_v25 = vld [vmem:[%s1309_s1 + $0x10] sm:$0xff]  ;;  %v411_v26 = vld [vmem:[%s1309_s1 + $0x8] sm:$0xff]  ;;  %859 = vmatprep.mubr.msk.f32.mxu0 %vm1062_vm0, %v1061_v1  ;;  %v410_v27 = vld [vmem:[%s1309_s1] sm:$0xff]  ;;  %v1208_v28 = vand.u32 127, %v263_v0 }
  0x27   : > { %845 = vmatprep.subr.mxu0 %v1061_v1  ;;  %905 = vmatprep.mubr.msk.f32.mxu1 %vm1062_vm0, %v1061_v1  ;;  %vm428_vm11 = vcmask 1042434   ;;  %vm430_vm12 = vcmask 1043459   ;;  %vm432_vm13 = vcmask 1044484   ;;  %vm434_vm14 = vcmask 1045509   ;;  %s255_s20 = sand.u32 1, %s1048_s22   ;;  %s809_s28 = sshll.u32 %s1120_s25, 7 }
  0x28   : > { %s795_s18 = sshll.u32 %s259_s17, 3  ;;  %v281_v3 = vsub.s32 2, %v266_v2  ;;  %v267_v4 = vsub.s32 0, %v266_v2  ;;  %v288_v5 = vsub.s32 3, %v266_v2  ;;  %v274_v6 = vsub.s32 1, %v266_v2  ;;  %846 = vmatpush3.msra.mxu0 %v416_v19  ;;  %s715_s12 = scalar_lea.hbm %s1314_s6, %s809_s28 }
  0x29   : > { %s261_s26 = scalar_lea.vmem %s1308_s0, %s795_s18  ;;  %v302_v12 = vsub.s32 5, %v266_v2  ;;  %v295_v13 = vsub.s32 4, %v266_v2  ;;  %v316_v16 = vsub.s32 7, %v266_v2  ;;  %v309_v17 = vsub.s32 6, %v266_v2  ;;  %847 = vmatprep.subr.mxu0 %v1061_v1  ;;  %s704_s13 = scalar_lea.sflag [#allocation4], %s255_s20 }
  0x2a   : > { %v262_v7 = vld [vmem:[%s261_s26] sm:$0xff]  ;;  %848 = vmatpush3.msra.mxu0 %v415_v22  ;;  %vm436_vm15 = vcmask 1046534   ;;  %s794_s26 = sshll.u32 %s255_s20, 3  ;;  %s1063_s15 = smov [#allocation5]  }
  0x2b   : > { %v282_v8 = vrot.slane %v262_v7, %v281_v3  ;;  %v268_v9 = vrot.slane %v262_v7, %v267_v4  ;;  %v289_v10 = vrot.slane %v262_v7, %v288_v5  ;;  %v275_v11 = vrot.slane %v262_v7, %v274_v6  ;;  %849 = vmatprep.subr.mxu0 %v1061_v1  ;;  %s257_s29 = scalar_lea.vmem [#allocation5], %s794_s26  ;;  %s996_s16 = sshll.u32 %s1063_s15, 4  ;;  %s997_s16 = int_to_ptr.vmem [resolvable:$false] %s996_s16 }
  0x2c   : > { %v303_v14 = vrot.slane %v262_v7, %v302_v12  ;;  %v296_v15 = vrot.slane %v262_v7, %v295_v13  ;;  %v317_v20 = vrot.slane %v262_v7, %v316_v16  ;;  %v310_v21 = vrot.slane %v262_v7, %v309_v17  ;;  %850 = vmatpush3.msra.mxu0 %v414_v23  ;;  %s717_s9 = sshll.u32 %s257_s29, 4  ;;  %s998_s25 = scalar_lea.vmem %s997_s16, 256  ;;  %s718_s9 = int_to_ptr.vmem [resolvable:$true] %s717_s9 }
  0x2d   : > { %284 = vbcast.lane.b32.xlu1 %v282_v8, 256  ;;  %270 = vbcast.lane.b32.xlu0 %v268_v9, 256  ;;  %s992_s14 = scalar_lea.vmem %s718_s9, 128  ;;  %p999_p11 = scmp.lt.s32.totalorder %s718_s9, %s997_s16 }
  0x2e   : > { %851 = vmatprep.subr.mxu0 %v1061_v1  ;;  %p993_p6 = scmp.ne.s32.totalorder %s718_s9, %s992_s14  ;;  %p1000_p12 = scmp.lt.s32.totalorder %s998_s25, %s992_s14 }
  0x2f   : > { %852 = vmatpush3.msra.mxu0 %v413_v24 }
  0x30   : > { %853 = vmatprep.subr.mxu0 %v1061_v1  ;;  %p994_p9 = pnand %p993_p6, %p1137_p5  ;;  %p1001_p13 = por %p1000_p12, %p999_p11 }
  0x31   : > { %291 = vbcast.lane.b32.xlu1 %v289_v10, 256  ;;  %277 = vbcast.lane.b32.xlu0 %v275_v11, 256 }
  0x32   : > { %854 = vmatpush3.msra.mxu0 %v412_v25  ;;  %p995_p10 = pneg %p994_p9 }
  0x33   : > { %855 = vmatprep.subr.mxu0 %v1061_v1 }
  0x34   : > { %856 = vmatpush3.msra.mxu0 %v411_v26  ;;  %p1002_p0 = pnand %p1001_p13, %p995_p10 }
  0x35   : > { %305 = vbcast.lane.b32.xlu1 %v303_v14, 256  ;;  %298 = vbcast.lane.b32.xlu0 %v296_v15, 256 }
  0x36   : > { %857 = vmatprep.subr.mxu0 %v1061_v1 }
  0x37   : > { %858 = vmatpush3.msra.mxu0 %v410_v27 }
  0x38   : > { %862 = vmatprep.subr.mxu0 %v1061_v1 }
  0x39   : > { %319 = vbcast.lane.b32.xlu1 %v317_v20, 256  ;;  %312 = vbcast.lane.b32.xlu0 %v310_v21, 256 }
  0x9f   : > { %v285_v29 = vpop.permute.xlu1 %284  ;;  %v271_v30 = vpop.permute.xlu0 %270 }
  0xa0   : > { %vm323_vm2 = vcmp.eq.s32.totalorder %v285_v29, %v1208_v28  ;;  %vm321_vm3 = vcmp.eq.s32.totalorder %v271_v30, %v1208_v28 }
  0xa1   : > { %v798_v31 = vsel %vm323_vm2, 1.0, %v1061_v1  ;;  %v796_v32 = vsel %vm321_vm3, 1.0, %v1061_v1  ;;  %vm438_vm2 = vcmask 1047559  }
  0xa2   : > { %v360_v33 = vsel %vm345_vm1, %v798_v31, 0.0  ;;  %v346_v34 = vsel %vm345_vm1, %v796_v32, 0.0 }
  0xa3   : > { %v361_v35 = vrot.slane %v360_v33, 4  ;;  %v347_v36 = vrot.slane %v346_v34, 4  ;;  %v292_v37 = vpop.permute.xlu1 %291  ;;  %v278_v38 = vpop.permute.xlu0 %277 }
  0xa4   : > { %vm324_vm4 = vcmp.eq.s32.totalorder %v292_v37, %v1208_v28  ;;  %vm322_vm5 = vcmp.eq.s32.totalorder %v278_v38, %v1208_v28 }
  0xa5   : > { %v362_v39 = vadd.f32 %v361_v35, %v360_v33  ;;  %v348_v40 = vadd.f32 %v347_v36, %v346_v34  ;;  %v799_v41 = vsel %vm324_vm4, 1.0, %v1061_v1  ;;  %v797_v42 = vsel %vm322_vm5, 1.0, %v1061_v1 }
  0xa6   : > { %v367_v43 = vsel %vm345_vm1, %v799_v41, 0.0  ;;  %v353_v44 = vsel %vm345_vm1, %v797_v42, 0.0 }
  0xa7   : > { %v363_v45 = vrot.slane %v362_v39, 2  ;;  %v349_v46 = vrot.slane %v348_v40, 2  ;;  %v368_v47 = vrot.slane %v367_v43, 4  ;;  %v354_v48 = vrot.slane %v353_v44, 4  ;;  %v306_v49 = vpop.permute.xlu1 %305  ;;  %v299_v50 = vpop.permute.xlu0 %298 }
  0xa8   : > { %vm326_vm6 = vcmp.eq.s32.totalorder %v306_v49, %v1208_v28  ;;  %vm325_vm7 = vcmp.eq.s32.totalorder %v299_v50, %v1208_v28 }
  0xa9   : > { %v364_v51 = vadd.f32 %v363_v45, %v362_v39  ;;  %v350_v52 = vadd.f32 %v349_v46, %v348_v40  ;;  %v369_v53 = vadd.f32 %v368_v47, %v367_v43  ;;  %v355_v54 = vadd.f32 %v354_v48, %v353_v44 }
  0xaa   : > { %v801_v55 = vsel %vm326_vm6, 1.0, %v1061_v1  ;;  %v800_v56 = vsel %vm325_vm7, 1.0, %v1061_v1 }
  0xab   : > { %v365_v57 = vrot.slane %v364_v51, 1  ;;  %v351_v58 = vrot.slane %v350_v52, 1  ;;  %v370_v59 = vrot.slane %v369_v53, 2  ;;  %v356_v60 = vrot.slane %v355_v54, 2  ;;  %v320_v61 = vpop.permute.xlu1 %319  ;;  %v313_v62 = vpop.permute.xlu0 %312 }
  0xac   : > { %v381_v63 = vsel %vm345_vm1, %v801_v55, 0.0  ;;  %v374_v0 = vsel %vm345_vm1, %v800_v56, 0.0  ;;  %vm328_vm8 = vcmp.eq.s32.totalorder %v320_v61, %v1208_v28  ;;  %vm327_vm9 = vcmp.eq.s32.totalorder %v313_v62, %v1208_v28  ;;  %v514_v55 = vld [vmem:[%s1310_s2 + $0x10] sm:$0xff]  ;;  %v513_v56 = vld [vmem:[%s1310_s2 + $0x8] sm:$0xff]  ;;  %v610_v61 = vld [vmem:[#allocation2 + $0x60] sm:$0xff] }
  0xad   : > { %v352_v2 = vadd.f32 %v351_v58, %v350_v52  ;;  %v371_v3 = vadd.f32 %v370_v59, %v369_v53  ;;  %v357_v4 = vadd.f32 %v356_v60, %v355_v54  ;;  %v382_v5 = vrot.slane %v381_v63, 4  ;;  %v515_v53 = vld [vmem:[%s1310_s2 + $0x18] sm:$0xff]  ;;  %v612_v59 = vld [vmem:[#allocation2 + $0x70] sm:$0xff]  ;;  %v611_v60 = vld [vmem:[#allocation2 + $0x68] sm:$0xff] }
  0xae   : > { %v375_v6 = vrot.slane %v374_v0, 4  ;;  %v803_v7 = vsel %vm328_vm8, 1.0, %v1061_v1  ;;  %v802_v8 = vsel %vm327_vm9, 1.0, %v1061_v1  ;;  %v366_v9 = vadd.f32 %v365_v57, %v364_v51  ;;  %v512_v57 = vld [vmem:[%s1310_s2] sm:$0xff]  ;;  %v613_v58 = vld [vmem:[#allocation2 + $0x78] sm:$0xff] }
  0xaf   : > { %v372_v10 = vrot.slane %v371_v3, 1  ;;  %v358_v11 = vrot.slane %v357_v4, 1  ;;  %v383_v12 = vadd.f32 %v382_v5, %v381_v63  ;;  %v395_v14 = vsel %vm345_vm1, %v803_v7, 0.0  ;;  %874 = vmatpush3.msra.mxu1 %v613_v58  ;;  %v609_v62 = vld [vmem:[#allocation2 + $0x58] sm:$0xff]  ;;  %v608_v63 = vld [vmem:[#allocation2 + $0x50] sm:$0xff]  ;;  %v603_v5 = vld [vmem:[#allocation2 + $0x28] sm:$0xff] }
  0xb0   : > { %v376_v13 = vadd.f32 %v375_v6, %v374_v0  ;;  %v388_v15 = vsel %vm345_vm1, %v802_v8, 0.0  ;;  %v396_v17 = vrot.slane %v395_v14, 4  ;;  %v402_v19 = vmul.f32 0.125, %v352_v2  ;;  %875 = vmatprep.subr.mxu1 %v1061_v1  ;;  %v607_v0 = vld [vmem:[#allocation2 + $0x48] sm:$0xff]  ;;  %v606_v2 = vld [vmem:[#allocation2 + $0x40] sm:$0xff]  ;;  %v601_v7 = vld [vmem:[#allocation2 + $0x18] sm:$0xff] }
  0xb1   : > { %v359_v16 = vadd.f32 %v358_v11, %v357_v4  ;;  %v389_v18 = vrot.slane %v388_v15, 4  ;;  %v384_v20 = vrot.slane %v383_v12, 2  ;;  %v373_v22 = vadd.f32 %v372_v10, %v371_v3  ;;  %876 = vmatpush3.msra.mxu1 %v612_v59  ;;  %v605_v3 = vld [vmem:[#allocation2 + $0x38] sm:$0xff]  ;;  %v604_v4 = vld [vmem:[#allocation2 + $0x30] sm:$0xff]  ;;  %v602_v6 = vld [vmem:[#allocation2 + $0x20] sm:$0xff] }
  0xb2   : > { %v377_v21 = vrot.slane %v376_v13, 2  ;;  %v397_v24 = vadd.f32 %v396_v17, %v395_v14  ;;  %v404_v26 = vmul.f32 0.125, %v366_v9  ;;  %877 = vmatprep.subr.mxu1 %v1061_v1  ;;  %v600_v10 = vld [vmem:[#allocation2 + $0x10] sm:$0xff]  ;;  %v599_v11 = vld [vmem:[#allocation2 + $0x8] sm:$0xff] }
  0xb3   : > { %v403_v23 = vmul.f32 0.125, %v359_v16  ;;  %v390_v25 = vadd.f32 %v389_v18, %v388_v15  ;;  %v385_v27 = vadd.f32 %v384_v20, %v383_v12  ;;  %v405_v36 = vmul.f32 0.125, %v373_v22  ;;  %878 = vmatpush3.msra.mxu1 %v611_v60  ;;  %v598_v12 = vld [vmem:[#allocation2] sm:$0xff] }
  0xb4   : > { %v378_v29 = vadd.f32 %v377_v21, %v376_v13  ;;  %v398_v31 = vrot.slane %v397_v24, 2  ;;  %879 = vmatprep.subr.mxu1 %v1061_v1  ;;  %v805_v13 = vld [vmem:[%s1311_s3] ss:$0 sm:$0xff] }
  0xb5   : > { %v427_v30 = vsel %vm426_vm10, %v403_v23, %v402_v19  ;;  %v391_v32 = vrot.slane %v390_v25, 2  ;;  %v386_v33 = vrot.slane %v385_v27, 1  ;;  %880 = vmatpush3.msra.mxu1 %v610_v61  ;;  %v807_v18 = vld [vmem:[%s1313_s5] ss:$0 sm:$0xff] }
  0xb6   : > { %v379_v34 = vrot.slane %v378_v29, 1  ;;  %v429_v35 = vsel %vm428_vm11, %v404_v26, %v427_v30  ;;  %v399_v37 = vadd.f32 %v398_v31, %v397_v24  ;;  %881 = vmatprep.subr.mxu1 %v1061_v1 }
  0xb7   : > { %v392_v38 = vadd.f32 %v391_v32, %v390_v25  ;;  %v387_v39 = vadd.f32 %v386_v33, %v385_v27  ;;  %v431_v43 = vsel %vm430_vm12, %v405_v36, %v429_v35  ;;  %882 = vmatpush3.msra.mxu1 %v609_v62 }
  0xb8   : > { %v380_v40 = vadd.f32 %v379_v34, %v378_v29  ;;  %v400_v41 = vrot.slane %v399_v37, 1  ;;  %883 = vmatprep.subr.mxu1 %v1061_v1 }
  0xb9   : > { %v393_v42 = vrot.slane %v392_v38, 1  ;;  %v407_v44 = vmul.f32 0.125, %v387_v39  ;;  %884 = vmatpush3.msra.mxu1 %v608_v63 }
  0xba   : > { %v406_v45 = vmul.f32 0.125, %v380_v40  ;;  %v401_v46 = vadd.f32 %v400_v41, %v399_v37  ;;  %885 = vmatprep.subr.mxu1 %v1061_v1 }
  0xbb   : > { %v394_v47 = vadd.f32 %v393_v42, %v392_v38  ;;  %886 = vmatpush3.msra.mxu1 %v607_v0 }
  0xbc   : > { %v433_v48 = vsel %vm432_vm13, %v406_v45, %v431_v43  ;;  %v409_v50 = vmul.f32 0.125, %v401_v46  ;;  %887 = vmatprep.subr.mxu1 %v1061_v1 }
  0xbd   : > { %v408_v49 = vmul.f32 0.125, %v394_v47  ;;  %v435_v51 = vsel %vm434_vm14, %v407_v44, %v433_v48  ;;  %888 = vmatpush3.msra.mxu1 %v606_v2 }
  0xbe   : > { %889 = vmatprep.subr.mxu1 %v1061_v1 }
  0xbf   : > { %v437_v52 = vsel %vm436_vm15, %v408_v49, %v435_v51  ;;  %890 = vmatpush3.msra.mxu1 %v605_v3 }
  0xc0   : > { %v439_v54 = vsel %vm438_vm2, %v409_v50, %v437_v52  ;;  %891 = vmatprep.subr.mxu1 %v1061_v1 }
  0xc1   : > { %860 = vmatmul.mubr.msk.f32.vlgmr.msra.gmra.mxu0 %vm345_vm1, %v439_v54  ;;  %892 = vmatpush3.msra.mxu1 %v604_v4  ;;  %vm691_vm1 = vcmp.lt.s32.totalorder %v1208_v28, 8 }
  0xc2   : > { %863 = vmatpush3.msra.mxu0 %v515_v53  ;;  %870 = vmatprep.mubr.msk.f32.mxu0 %vm1062_vm0, %v1061_v1  ;;  %vm523_vm0 = vcmask 261120  }
  0xc3   : > { %864 = vmatprep.subr.mxu0 %v1061_v1  ;;  %893 = vmatprep.subr.mxu1 %v1061_v1 }
  0xc4   : > { %865 = vmatpush3.msra.mxu0 %v514_v55  ;;  %894 = vmatpush3.msra.mxu1 %v603_v5 }
  0xc5   : > { %866 = vmatprep.subr.mxu0 %v1061_v1  ;;  %895 = vmatprep.subr.mxu1 %v1061_v1 }
  0xc6   : > { %867 = vmatpush3.msra.mxu0 %v513_v56  ;;  %896 = vmatpush3.msra.mxu1 %v602_v6 }
  0xc7   : > { %868 = vmatprep.subr.mxu0 %v1061_v1  ;;  %897 = vmatprep.subr.mxu1 %v1061_v1 }
  0xc8   : > { %869 = vmatpush3.msra.mxu0 %v512_v57  ;;  %898 = vmatpush3.msra.mxu1 %v601_v7 }
  0xc9   : > { %899 = vmatprep.subr.mxu1 %v1061_v1 }
  0xca   : > { %900 = vmatpush3.msra.mxu1 %v600_v10 }
  0xcb   : > { %901 = vmatprep.subr.mxu1 %v1061_v1 }
  0xcc   : > { %902 = vmatpush3.msra.mxu1 %v599_v11 }
  0xcd   : > { %903 = vmatprep.subr.mxu1 %v1061_v1 }
  0xce   : > { %904 = vmatpush3.msra.mxu1 %v598_v12 }
 0x181   : > { %v508_v8 = vpop.f32.mrf.mxu0 }
 0x182   : > { %871 = vmatmul.mubr.msk.f32.vlgmr.msra.gmra.mxu0 %vm523_vm0, %v508_v8 }
 0x183   : > { %v861_v9 = vpop.f32.mrf.mxu0 }
 0x242   : > { %v593_v14 = vpop.f32.mrf.mxu0 }
 0x243   : > { %v594_v15 = vadd.f32 %v805_v13, %v593_v14 }
 0x244   : > { %v872_v16 = vpop.f32.mrf.mxu0 }
 0x245   : > { %v597_v17 = vmax.f32 %v594_v15, 0.0 }
 0x247   : > { %906 = vmatmul.mubr.f32.vlgmr.msra.gmra.mxu1 %v597_v17 }
 0x307   : > { %v687_v19 = vpop.f32.mrf.mxu1 }
 0x308   : > { %v688_v1 = vadd.f32 %v807_v18, %v687_v19 }
 0x309   : > { %v907_v20 = vpop.f32.mrf.mxu1 }
 0x30a   : > { %v692_v21 = vsel %vm691_vm1, %v688_v1, -1e+30 }
 0x30b   : > { %693 = vmax.xlane.f32.xlu0 %v692_v21 }
 0x394   : > { %v694_v22 = vpop.xlane.xlu0 %693 }
 0x395   : > { %v695_v23 = vsub.f32 %v692_v21, %v694_v22 }
 0x397   : > { %v696_v24 = vmul.f32 1.442695, %v695_v23 }
 0x399   : > { %962 = vpow2.f32 %v696_v24 }
 0x3a6   : > { %v963_v25 = vpop.eup %962 }
 0x3a7   : > { %698 = vadd.xlane.f32.xlu1 %v963_v25 }
 0x430   : > { %v699_v26 = vpop.xlane.xlu1 %698 }
 0x431   : > { %964 = vrcp.f32 %v699_v26 }
 0x43e   : > { %v965_v27 = vpop.eup %964 }
 0x43f   : > { %v701_v28 = vmul.f32 %v965_v27, %v963_v25 }
 0x441   : > { %702 = vst [vmem:[%s257_s29] sm:$0xff] %v701_v28 }
 0x442   : > { %1005 = shalt.err (!%p1002_p0)
}
 0x443   : > { %s1006_s17 = scalar_lea.hbm %s715_s12, 128  ;;  %s1010_s20 = scalar_lea.hbm %s1314_s6, 256 }
 0x444   : > { %p1007_p1 = scmp.ne.s32.totalorder %s715_s12, %s1006_s17  ;;  %p1011_p4 = scmp.lt.s32.totalorder %s715_s12, %s1314_s6 }
 0x445   : > { %p1012_p7 = scmp.lt.s32.totalorder %s1010_s20, %s1006_s17 }
 0x446   : > { %p1008_p2 = pnand %p1007_p1, %p1137_p5 }
 0x447   : > { %p1013_p8 = por %p1012_p7, %p1011_p4 }
 0x448   : > { %p1009_p3 = pneg %p1008_p2 }
 0x44a   : > { %p1014_p6 = pnand %p1013_p8, %p1009_p3 }
 0x44c   : > { %1017 = shalt.err (!%p1014_p6)
}
 0x44d   : > { %912 = dma.vmem_to_hbm [thread:$0]  (%p1137_p5), %s718_s9, 128, %s715_s12, %s704_s13  }
 0x44e PF: > { %p924_p9 = scmp.ge.s32.totalorder %s1056_s24, 2  ;;  %s729_s29 = sand.u32 1, %s1044_s21  }
 0x44f   : > { %p1318_p10 = scmp.ne.s32.totalorder %s1316_s8, 0  ;;  %s730_s10 = scalar_lea.sflag [#allocation4], %s729_s29 }
 0x451   : > { %p919_p11 = pnand %p924_p9, %p1318_p10 }
 0x453   : > { %p920_p12 = pneg %p919_p11 }
 0x455   : > { %1039 = dma.done.wait (%p920_p12), %s730_s10, 128  }
 0x456   : > { %1041 = vsyncadd (%p920_p12), %s730_s10, 4294967168  ;;  %p17_p13 = scmp.ge.s32.totalorder %s1124_s27, 4   ;;  %s1319_s21 = smov %s1048_s22 }
 0x457   : > { %s1320_s22 = smov %s1052_s23  ;;  %s1321_s23 = smov %s1135_s30 }
 0x458   : > { %s1322_s24 = smov %s1124_s27  ;;  %19 = sbr.rel (!%p17_p13) target bundleno = 4 (0x4), region = 84 }
 0x45d   :  { %735 = vsyncpa [#allocation3], 1 }
 0x45e   :  { %737 = vsyncpa [#allocation3 + $0x1], 1 }
 0x45f   :  { %738 = vsyncpa [#allocation4], 1 }
 0x460   :  { %740 = vsyncpa [#allocation4 + $0x1], 1 }

</bundles_post_ra>
